<compile_context>
chip_gen: v7x
topology: tpu7x:2x2x1
jax: 0.10.0
libtpu: 0.0.40
codegen_flags: <defaults>
</compile_context>

<pallas_src>
import functools

import numpy as np
import jax
import jax.numpy as jnp
from jax.experimental import pallas as pl
from jax.experimental.pallas import tpu as pltpu


def _round_up(v, m):
    return (v + m - 1) // m * m


# -----------------------------------------------------------------------------
# Pallas kernel (feature-major: batch on lanes)
# -----------------------------------------------------------------------------
def _metric_chol_kernel(xT_ref, w1_ref, b1_ref, w2_ref, b2_ref, w3_ref, b3_ref,
                        ab_ref, gm_ref, lm_ref,
                        *, n_dims, offset, cast_dtype):
    d = n_dims
    dd = d * d

    # MLP trunk: W @ X^T so the batch fills the MXU N-dim / VPU lanes.
    xT = xT_ref[...]
    h1 = jnp.maximum(
        jnp.dot(w1_ref[...], xT, preferred_element_type=jnp.float32)
        + b1_ref[...], 0.0)
    h2 = jnp.maximum(
        jnp.dot(w2_ref[...], h1.astype(cast_dtype),
                preferred_element_type=jnp.float32)
        + b2_ref[...], 0.0)

    # Fused head (diag + off-diag, scatters precomposed host-side):
    #   z[i*d+i, b] = fc3_ld(h2)[i] + 1        (pre-abs diagonal)
    #   z[r*d+c, b] = fc3_lo(h2)[q]  (r>c)     (strict lower triangle)
    #   z[.., b]    = 0                         (strict upper triangle)
    z = (jnp.dot(w3_ref[...], h2.astype(cast_dtype),
                 preferred_element_type=jnp.float32)
         + b3_ref[...])

    # Diagonal rows of the flat layout are exactly the multiples of (d+1).
    row = jax.lax.broadcasted_iota(jnp.int32, z.shape, 0)
    is_diag = (row % (d + 1)) == 0
    lm = jnp.where(is_diag, jnp.abs(z) + offset, z)     # flat L, (dd, tn)

    # G = L L^T with one stacked one-hot expansion matmul:
    #   both[j*dd + i*d + k,         b] = L[b, i, j]    (left  half)
    #   both[d*dd + j*dd + i*d + k,  b] = L[b, k, j]    (right half)
    # gm[i*d+k, b] = sum_j left*right  -> reduce d contiguous (dd, tn) slices.
    ddd = d * dd
    both = jnp.dot(ab_ref[...], lm, preferred_element_type=jnp.float32)
    prod = both[0:ddd, :] * both[ddd:2 * ddd, :]
    gm = prod[0:dd, :]
    for j in range(1, d):                                # static unroll, d is small
        gm = gm + prod[j * dd:(j + 1) * dd, :]

    gm_ref[...] = gm
    lm_ref[...] = lm


# -----------------------------------------------------------------------------
# Host-side parameter fusion / constant construction
# -----------------------------------------------------------------------------
def _build_fused_params(params, n_dims, compute_dtype):
    w1, b1, w2, b2, w3d, b3d, w3o, b3o = params   # PyTorch (out, in) layout
    d = n_dims
    dd = d * d
    h2 = int(np.asarray(w2).shape[0])

    diag_flat = np.arange(d) * d + np.arange(d)
    rows, cols = np.tril_indices(d, -1)           # == torch.tril_indices(d, d, -1)
    off_flat = rows * d + cols

    # Fused head weight/bias: one (dd, h2) matmul lands flat-L directly.
    w3 = np.zeros((dd, h2), np.float32)
    b3 = np.zeros((dd,), np.float32)
    w3[diag_flat] = np.asarray(w3d, np.float32)
    w3[off_flat] = np.asarray(w3o, np.float32)
    b3[diag_flat] = np.asarray(b3d, np.float32) + 1.0   # fold the "+1"
    b3[off_flat] = np.asarray(b3o, np.float32)

    # Stacked expansion matrices for G = L L^T, concatenated into one constant
    # so the kernel issues a single MXU pass for both gathers.
    a_all = np.zeros((d * dd, dd), np.float32)
    b_all = np.zeros((d * dd, dd), np.float32)
    for j in range(d):
        for i in range(d):
            for k in range(d):
                a_all[j * dd + i * d + k, i * d + j] = 1.0
                b_all[j * dd + i * d + k, k * d + j] = 1.0
    ab_all = np.concatenate([a_all, b_all], axis=0)      # (2*d*dd, dd)

    return dict(
        w1=jnp.asarray(np.asarray(w1, np.float32), compute_dtype),
        b1=jnp.asarray(np.asarray(b1, np.float32).reshape(-1, 1)),
        w2=jnp.asarray(np.asarray(w2, np.float32), compute_dtype),
        b2=jnp.asarray(np.asarray(b2, np.float32).reshape(-1, 1)),
        w3=jnp.asarray(w3, compute_dtype),
        b3=jnp.asarray(b3.reshape(-1, 1)),
        ab_all=jnp.asarray(ab_all),
    )


# -----------------------------------------------------------------------------
# Wrapper
# -----------------------------------------------------------------------------
def metric_chol_net_forward(x, params, *, n_dims, offset=1e-5, batch_tile=512,
                            compute_dtype=jnp.float32):
    assert n_dims > 1, "kernel requires n_dims >= 2"   # TODO(synk): n_dims==1 branch
    d = n_dims
    dd = d * d
    n = x.shape[0]

    # Lane-dense batch tile: multiple of 128, padded batch, 1-D parallel grid.
    tn = _round_up(min(int(batch_tile), max(n, 1)), 128)
    n_pad = _round_up(n, tn)
    grid = (n_pad // tn,)

    fused = _build_fused_params(params, n_dims, compute_dtype)
    h1 = fused["w1"].shape[0]
    h2 = fused["w2"].shape[0]

    x_pad = jnp.pad(x.astype(jnp.float32), ((0, n_pad - n), (0, 0)))
    xT = x_pad.T.astype(compute_dtype)                 # (d, n_pad), batch on lanes

    def const_spec(shape):
        return pl.BlockSpec(shape, lambda i: (0, 0))

    kernel = functools.partial(_metric_chol_kernel, n_dims=d, offset=offset,
                               cast_dtype=compute_dtype)

    # Advisory cost estimate (tiny kernel): trunk + fused head + expansion matmul.
    flops = 2 * n_pad * (d * h1 + h1 * h2 + h2 * dd + 2 * d * dd * dd)
    bytes_accessed = 4 * n_pad * (d + 2 * dd) + 4 * (
        h1 * d + h1 + h2 * h1 + h2 + dd * h2 + dd + 2 * d * dd * dd)

    gm_t, lm_t = pl.pallas_call(
        kernel,
        out_shape=(jax.ShapeDtypeStruct((dd, n_pad), jnp.float32),
                   jax.ShapeDtypeStruct((dd, n_pad), jnp.float32)),
        grid=grid,
        in_specs=[
            pl.BlockSpec((d, tn), lambda i: (0, i)),   # x^T (batch tiled on lanes)
            const_spec((h1, d)), const_spec((h1, 1)),  # fc1
            const_spec((h2, h1)), const_spec((h2, 1)), # fc2
            const_spec((dd, h2)), const_spec((dd, 1)), # fused head (+scatters, +1)
            const_spec((2 * d * dd, dd)),              # [A_all; B_all] stacked
        ],
        out_specs=[
            pl.BlockSpec((dd, tn), lambda i: (0, i)),  # gm flat (lane-dense)
            pl.BlockSpec((dd, tn), lambda i: (0, i)),  # lm flat (lane-dense)
        ],
        compiler_params=pltpu.CompilerParams(dimension_semantics=("parallel",)),
        cost_estimate=pl.CostEstimate(flops=flops, transcendentals=0,
                                      bytes_accessed=bytes_accessed),
    )(xT, fused["w1"], fused["b1"], fused["w2"], fused["b2"],
      fused["w3"], fused["b3"], fused["ab_all"])

    # Layout plumbing back to (N, d, d) in plain JAX.
    gm = gm_t.T.reshape(n_pad, d, d)[:n]
    lm = lm_t.T.reshape(n_pad, d, d)[:n]
    return gm, lm


# -----------------------------------------------------------------------------
# Pure-JAX reference (mirrors the PyTorch forward; params in (out, in) layout)
# -----------------------------------------------------------------------------
def metric_chol_net_reference(x, params, *, n_dims, offset=1e-5):
    w1, b1, w2, b2, w3d, b3d, w3o, b3o = params
    n = x.shape[0]
    h = jax.nn.relu(x @ w1.T + b1)
    h = jax.nn.relu(h @ w2.T + b2)
    ld = jnp.abs(h @ w3d.T + b3d + 1.0) + offset
    lo = h @ w3o.T + b3o
    lm = jnp.zeros((n, n_dims, n_dims), jnp.float32)
    diag = np.arange(n_dims)
    rows, cols = np.tril_indices(n_dims, -1)
    lm = lm.at[:, diag, diag].set(ld)
    lm = lm.at[:, rows, cols].set(lo)
    gm = jnp.einsum("bij,bkj->bik", lm, lm)
    return gm, lm


# -----------------------------------------------------------------------------
# Main
# -----------------------------------------------------------------------------
if __name__ == "__main__":
    N, D, H1, H2 = 256, 4, 32, 32      # batch large enough for two 128-lane tiles
    N_OFF = D * (D - 1) // 2

    key = jax.random.PRNGKey(0)
    keys = jax.random.split(key, 9)
    # Deterministic synthetic parameters in PyTorch nn.Linear (out, in) layout.
    # fc3_* heads are zero-initialized in the module's __init__; small random
    # values here so the off-diagonal / metric path is actually exercised.
    params = (
        jax.random.normal(keys[0], (H1, D), jnp.float32) * 0.3,       # w1
        jax.random.normal(keys[1], (H1,), jnp.float32) * 0.1,         # b1
        jax.random.normal(keys[2], (H2, H1), jnp.float32) * 0.2,      # w2
        jax.random.normal(keys[3], (H2,), jnp.float32) * 0.1,         # b2
        jax.random.normal(keys[4], (D, H2), jnp.float32) * 0.1,       # w3_ld
        jax.random.normal(keys[5], (D,), jnp.float32) * 0.05,         # b3_ld
        jax.random.normal(keys[6], (N_OFF, H2), jnp.float32) * 0.1,   # w3_lo
        jax.random.normal(keys[7], (N_OFF,), jnp.float32) * 0.05,     # b3_lo
    )
    x = jax.random.normal(keys[8], (N, D), jnp.float32)

    # batch_tile=128 -> 2 grid steps, shardable across v7x's two TensorCores.
    gm, lm = metric_chol_net_forward(x, params, n_dims=D, batch_tile=128)
    gm = jax.block_until_ready(gm)
    lm = jax.block_until_ready(lm)

    gm_ref, lm_ref = metric_chol_net_reference(x, params, n_dims=D)
    np.testing.assert_allclose(np.asarray(lm), np.asarray(lm_ref), rtol=1e-4, atol=1e-4)
    np.testing.assert_allclose(np.asarray(gm), np.asarray(gm_ref), rtol=1e-4, atol=1e-4)

    print("KERNEL_OK")
</pallas_src>

<mosaic_0001>
module attributes {stable_mosaic.version = 11 : i64} {
  func.func @_metric_chol_kernel(%arg0: i32, %arg1: memref<4x128xf32, #tpu.memory_space<vmem>>, %arg2: memref<32x4xf32, #tpu.memory_space<vmem>>, %arg3: memref<32x1xf32, #tpu.memory_space<vmem>>, %arg4: memref<32x32xf32, #tpu.memory_space<vmem>>, %arg5: memref<32x1xf32, #tpu.memory_space<vmem>>, %arg6: memref<16x32xf32, #tpu.memory_space<vmem>>, %arg7: memref<16x1xf32, #tpu.memory_space<vmem>>, %arg8: memref<128x16xf32, #tpu.memory_space<vmem>>, %arg9: memref<16x128xf32, #tpu.memory_space<vmem>>, %arg10: memref<16x128xf32, #tpu.memory_space<vmem>>) attributes {dimension_semantics = [#tpu.dimension_semantics<parallel>], iteration_bounds = array<i64: 2>, scalar_prefetch = 0 : i64, scratch_operands = 0 : i64, tpu.core_type = #tpu.core_type<tc>, window_params = [{transform_indices = @transform_0, window_bounds = array<i64: 4, 128>}, {pipeline_mode = #tpu.pipeline_mode<synchronous>, transform_indices = @transform_1, window_bounds = array<i64: 32, 4>}, {pipeline_mode = #tpu.pipeline_mode<synchronous>, transform_indices = @transform_2, window_bounds = array<i64: 32, 1>}, {pipeline_mode = #tpu.pipeline_mode<synchronous>, transform_indices = @transform_3, window_bounds = array<i64: 32, 32>}, {pipeline_mode = #tpu.pipeline_mode<synchronous>, transform_indices = @transform_4, window_bounds = array<i64: 32, 1>}, {pipeline_mode = #tpu.pipeline_mode<synchronous>, transform_indices = @transform_5, window_bounds = array<i64: 16, 32>}, {pipeline_mode = #tpu.pipeline_mode<synchronous>, transform_indices = @transform_6, window_bounds = array<i64: 16, 1>}, {pipeline_mode = #tpu.pipeline_mode<synchronous>, transform_indices = @transform_7, window_bounds = array<i64: 128, 16>}, {transform_indices = @transform_8, window_bounds = array<i64: 16, 128>}, {transform_indices = @transform_9, window_bounds = array<i64: 16, 128>}]} {
    %c0 = arith.constant 0 : index
    %c0_0 = arith.constant 0 : index
    %0 = vector.load %arg1[%c0, %c0_0] : memref<4x128xf32, #tpu.memory_space<vmem>>, vector<4x128xf32>
    %c0_1 = arith.constant 0 : index
    %c0_2 = arith.constant 0 : index
    %1 = vector.load %arg2[%c0_1, %c0_2] : memref<32x4xf32, #tpu.memory_space<vmem>>, vector<32x4xf32>
    %cst = arith.constant dense<0.000000e+00> : vector<32x128xf32>
    %2 = tpu.matmul %1, %0, %cst {dimension_numbers = #tpu.dot_dimension_numbers<[1], [0], [0], [1], [0, 0, 1, 1], [], []>} : vector<32x4xf32>, vector<4x128xf32>, vector<32x128xf32> -> vector<32x128xf32>
    %c0_3 = arith.constant 0 : index
    %c0_4 = arith.constant 0 : index
    %3 = vector.load %arg3[%c0_3, %c0_4] : memref<32x1xf32, #tpu.memory_space<vmem>>, vector<32x1xf32>
    %4 = vector.broadcast %3 : vector<32x1xf32> to vector<32x128xf32>
    %5 = arith.addf %2, %4 : vector<32x128xf32>
    %cst_5 = arith.constant 0.000000e+00 : f32
    %6 = vector.broadcast %cst_5 : f32 to vector<32x128xf32>
    %7 = arith.maximumf %5, %6 : vector<32x128xf32>
    %c0_6 = arith.constant 0 : index
    %c0_7 = arith.constant 0 : index
    %8 = vector.load %arg4[%c0_6, %c0_7] : memref<32x32xf32, #tpu.memory_space<vmem>>, vector<32x32xf32>
    %cst_8 = arith.constant dense<0.000000e+00> : vector<32x128xf32>
    %9 = tpu.matmul %8, %7, %cst_8 {dimension_numbers = #tpu.dot_dimension_numbers<[1], [0], [0], [1], [0, 0, 1, 1], [], []>} : vector<32x32xf32>, vector<32x128xf32>, vector<32x128xf32> -> vector<32x128xf32>
    %c0_9 = arith.constant 0 : index
    %c0_10 = arith.constant 0 : index
    %10 = vector.load %arg5[%c0_9, %c0_10] : memref<32x1xf32, #tpu.memory_space<vmem>>, vector<32x1xf32>
    %11 = vector.broadcast %10 : vector<32x1xf32> to vector<32x128xf32>
    %12 = arith.addf %9, %11 : vector<32x128xf32>
    %cst_11 = arith.constant 0.000000e+00 : f32
    %13 = vector.broadcast %cst_11 : f32 to vector<32x128xf32>
    %14 = arith.maximumf %12, %13 : vector<32x128xf32>
    %c0_12 = arith.constant 0 : index
    %c0_13 = arith.constant 0 : index
    %15 = vector.load %arg6[%c0_12, %c0_13] : memref<16x32xf32, #tpu.memory_space<vmem>>, vector<16x32xf32>
    %cst_14 = arith.constant dense<0.000000e+00> : vector<16x128xf32>
    %16 = tpu.matmul %15, %14, %cst_14 {dimension_numbers = #tpu.dot_dimension_numbers<[1], [0], [0], [1], [0, 0, 1, 1], [], []>} : vector<16x32xf32>, vector<32x128xf32>, vector<16x128xf32> -> vector<16x128xf32>
    %c0_15 = arith.constant 0 : index
    %c0_16 = arith.constant 0 : index
    %17 = vector.load %arg7[%c0_15, %c0_16] : memref<16x1xf32, #tpu.memory_space<vmem>>, vector<16x1xf32>
    %18 = vector.broadcast %17 : vector<16x1xf32> to vector<16x128xf32>
    %19 = arith.addf %16, %18 : vector<16x128xf32>
    %20 = tpu.iota {dimensions = array<i32: 0>} : vector<16x128xi32>
    %c5_i32 = arith.constant 5 : i32
    %c0_i32 = arith.constant 0 : i32
    %21 = arith.cmpi eq, %c5_i32, %c0_i32 : i32
    %c1_i32 = arith.constant 1 : i32
    %22 = arith.select %21, %c1_i32, %c5_i32 : i32
    %23 = vector.broadcast %22 : i32 to vector<16x128xi32>
    %24 = arith.remsi %20, %23 : vector<16x128xi32>
    %c0_i32_17 = arith.constant 0 : i32
    %25 = vector.broadcast %c0_i32_17 : i32 to vector<16x128xi32>
    %26 = arith.cmpi ne, %24, %25 : vector<16x128xi32>
    %c0_i32_18 = arith.constant 0 : i32
    %27 = vector.broadcast %c0_i32_18 : i32 to vector<16x128xi32>
    %28 = arith.cmpi slt, %24, %27 : vector<16x128xi32>
    %c0_i32_19 = arith.constant 0 : i32
    %29 = arith.cmpi slt, %22, %c0_i32_19 : i32
    %30 = vector.broadcast %29 : i1 to vector<16x128xi1>
    %31 = vector.broadcast %30 : vector<16x128xi1> to vector<16x128xi1>
    %32 = arith.xori %28, %31 : vector<16x128xi1>
    %33 = arith.andi %32, %26 : vector<16x128xi1>
    %34 = vector.broadcast %22 : i32 to vector<16x128xi32>
    %35 = arith.addi %24, %34 : vector<16x128xi32>
    %36 = arith.select %33, %35, %24 : vector<16x128xi1>, vector<16x128xi32>
    %c0_i32_20 = arith.constant 0 : i32
    %37 = vector.broadcast %c0_i32_20 : i32 to vector<16x128xi32>
    %38 = arith.cmpi eq, %36, %37 : vector<16x128xi32>
    %39 = math.absf %19 : vector<16x128xf32>
    %cst_21 = arith.constant 9.99999974E-6 : f32
    %40 = vector.broadcast %cst_21 : f32 to vector<16x128xf32>
    %41 = arith.addf %39, %40 : vector<16x128xf32>
    %42 = arith.select %38, %41, %19 : vector<16x128xi1>, vector<16x128xf32>
    %c0_22 = arith.constant 0 : index
    %c0_23 = arith.constant 0 : index
    %43 = vector.load %arg8[%c0_22, %c0_23] : memref<128x16xf32, #tpu.memory_space<vmem>>, vector<128x16xf32>
    %cst_24 = arith.constant dense<0.000000e+00> : vector<128x128xf32>
    %44 = tpu.matmul %43, %42, %cst_24 {dimension_numbers = #tpu.dot_dimension_numbers<[1], [0], [0], [1], [0, 0, 1, 1], [], []>} : vector<128x16xf32>, vector<16x128xf32>, vector<128x128xf32> -> vector<128x128xf32>
    %45 = vector.extract_strided_slice %44 {offsets = [0, 0], sizes = [64, 128], strides = [1, 1]} : vector<128x128xf32> to vector<64x128xf32>
    %46 = vector.extract_strided_slice %44 {offsets = [64, 0], sizes = [64, 128], strides = [1, 1]} : vector<128x128xf32> to vector<64x128xf32>
    %47 = arith.mulf %45, %46 : vector<64x128xf32>
    %48 = vector.extract_strided_slice %47 {offsets = [0, 0], sizes = [16, 128], strides = [1, 1]} : vector<64x128xf32> to vector<16x128xf32>
    %49 = vector.extract_strided_slice %47 {offsets = [16, 0], sizes = [16, 128], strides = [1, 1]} : vector<64x128xf32> to vector<16x128xf32>
    %50 = arith.addf %48, %49 : vector<16x128xf32>
    %51 = vector.extract_strided_slice %47 {offsets = [32, 0], sizes = [16, 128], strides = [1, 1]} : vector<64x128xf32> to vector<16x128xf32>
    %52 = arith.addf %50, %51 : vector<16x128xf32>
    %53 = vector.extract_strided_slice %47 {offsets = [48, 0], sizes = [16, 128], strides = [1, 1]} : vector<64x128xf32> to vector<16x128xf32>
    %54 = arith.addf %52, %53 : vector<16x128xf32>
    %c0_25 = arith.constant 0 : index
    %c0_26 = arith.constant 0 : index
    %55 = vector.load %arg9[%c0_25, %c0_26] : memref<16x128xf32, #tpu.memory_space<vmem>>, vector<16x128xf32>
    tpu.vector_store %arg9[%c0_25, %c0_26], %54 {strides = array<i32>} : memref<16x128xf32, #tpu.memory_space<vmem>>, vector<16x128xf32>,
    %c0_27 = arith.constant 0 : index
    %c0_28 = arith.constant 0 : index
    %56 = vector.load %arg10[%c0_27, %c0_28] : memref<16x128xf32, #tpu.memory_space<vmem>>, vector<16x128xf32>
    tpu.vector_store %arg10[%c0_27, %c0_28], %42 {strides = array<i32>} : memref<16x128xf32, #tpu.memory_space<vmem>>, vector<16x128xf32>,
    return
  }
  func.func @transform_0(%arg0: i32) -> (i32, i32) {
    %c0_i32 = arith.constant 0 : i32
    %c0_i32_0 = arith.constant 0 : i32
    return %c0_i32, %arg0 : i32, i32
  }
  func.func @transform_1(%arg0: i32) -> (i32, i32) {
    %c0_i32 = arith.constant 0 : i32
    %c0_i32_0 = arith.constant 0 : i32
    %c0_i32_1 = arith.constant 0 : i32
    return %c0_i32, %c0_i32_0 : i32, i32
  }
  func.func @transform_2(%arg0: i32) -> (i32, i32) {
    %c0_i32 = arith.constant 0 : i32
    %c0_i32_0 = arith.constant 0 : i32
    %c0_i32_1 = arith.constant 0 : i32
    return %c0_i32, %c0_i32_0 : i32, i32
  }
  func.func @transform_3(%arg0: i32) -> (i32, i32) {
    %c0_i32 = arith.constant 0 : i32
    %c0_i32_0 = arith.constant 0 : i32
    %c0_i32_1 = arith.constant 0 : i32
    return %c0_i32, %c0_i32_0 : i32, i32
  }
  func.func @transform_4(%arg0: i32) -> (i32, i32) {
    %c0_i32 = arith.constant 0 : i32
    %c0_i32_0 = arith.constant 0 : i32
    %c0_i32_1 = arith.constant 0 : i32
    return %c0_i32, %c0_i32_0 : i32, i32
  }
  func.func @transform_5(%arg0: i32) -> (i32, i32) {
    %c0_i32 = arith.constant 0 : i32
    %c0_i32_0 = arith.constant 0 : i32
    %c0_i32_1 = arith.constant 0 : i32
    return %c0_i32, %c0_i32_0 : i32, i32
  }
  func.func @transform_6(%arg0: i32) -> (i32, i32) {
    %c0_i32 = arith.constant 0 : i32
    %c0_i32_0 = arith.constant 0 : i32
    %c0_i32_1 = arith.constant 0 : i32
    return %c0_i32, %c0_i32_0 : i32, i32
  }
  func.func @transform_7(%arg0: i32) -> (i32, i32) {
    %c0_i32 = arith.constant 0 : i32
    %c0_i32_0 = arith.constant 0 : i32
    %c0_i32_1 = arith.constant 0 : i32
    return %c0_i32, %c0_i32_0 : i32, i32
  }
  func.func @transform_8(%arg0: i32) -> (i32, i32) {
    %c0_i32 = arith.constant 0 : i32
    %c0_i32_0 = arith.constant 0 : i32
    return %c0_i32, %arg0 : i32, i32
  }
  func.func @transform_9(%arg0: i32) -> (i32, i32) {
    %c0_i32 = arith.constant 0 : i32
    %c0_i32_0 = arith.constant 0 : i32
    return %c0_i32, %arg0 : i32, i32
  }
}

</mosaic_0001>

<bundles_post_ra>
// kernel: tpu_custom_call.1
= control target key start
LH: loop header
LB: loop body
LE: loop exit
PB: predicated region body
PF: predicated region fallthrough
CT: control target
= control target key end

     0   :  { %15 = vsyncpa [#allocation3], 0  ;;  %s1761_s0 = inlined_call_operand.vmem [shape: f32[4,256], index: 0, kind: input, shape index: {}]   ;;  %s1762_s1 = inlined_call_operand.vmem [shape: f32[32,4], index: 1, kind: input, shape index: {}]   ;;  %s1763_s2 = inlined_call_operand.vmem [shape: f32[32,1], index: 2, kind: input, shape index: {}]   ;;  %s1764_s3 = inlined_call_operand.vmem [shape: f32[32,32], index: 3, kind: input, shape index: {}]   ;;  %s1765_s4 = inlined_call_operand.vmem [shape: f32[32,1], index: 4, kind: input, shape index: {}]   ;;  %s1766_s5 = inlined_call_operand.vmem [shape: f32[16,32], index: 5, kind: input, shape index: {}]   ;;  %s1767_s6 = inlined_call_operand.vmem [shape: f32[16,1], index: 6, kind: input, shape index: {}]   ;;  %s1768_s7 = inlined_call_operand.vmem [shape: f32[128,16], index: 7, kind: input, shape index: {}]   ;;  %s1769_s8 = inlined_call_operand.hbm [shape: f32[16,256], index: 8, kind: output, shape index: {0}]   ;;  %s1770_s9 = inlined_call_operand.hbm [shape: f32[16,256], index: 9, kind: output, shape index: {1}]  }
   0x1   :  { %17 = vsyncpa [#allocation3 + $0x1], 0 }
   0x2   :  { %18 = vsyncpa [#allocation5], 0 }
   0x3   :  { %20 = vsyncpa [#allocation5 + $0x1], 0  ;;  %s1463_s30 = smov 0   ;;  %s1465_s10 = smov 0  }
   0x4   :  { %s1467_s11 = smov 0   ;;  %s1469_s12 = smov 0  }
   0x5 LB: > { %s1484_s13 = sadd.s32 4294967295, %s1405_s12   ;;  %s1097_s14 = sadd.s32 4294967294, %s1405_s12   ;;  %s1405_s12 = sphi %s1469_s12, %s1787_s12   ;;  %s1401_s11 = sphi %s1467_s11, %s1786_s11   ;;  %s1397_s10 = sphi %s1465_s10, %s1785_s10   ;;  %s1393_s30 = sphi %s1463_s30, %s1784_s30  }
   0x6   : > { %s1488_s15 = sadd.s32 1, %s1405_s12   ;;  %s206_s16 = sadd.s32 1, %s1401_s11 }
   0x7   : > { %s203_s17 = ssub.s32 %s1405_s12, %s1488_s15  ;;  %p216_p0 = scmp.ne.s32.totalorder %s1401_s11, %s1397_s10 }
   0x8   : > { %p204_p1 = scmp.eq.s32.totalorder %s203_s17, 0  ;;  %p217_p2 = scmp.eq.s32.totalorder %s1484_s13, 1 }
   0x9   : > { %p222_p3 = scmp.ne.s32.totalorder %s1397_s10, %s1393_s30  ;;  %p223_p4 = scmp.eq.s32.totalorder %s1097_s14, 1 }
   0xa   : > { %s1499_s18 = scalar_select %p204_p1, %s1401_s11, %s206_s16  }
   0xb   : > { %p1501_p5 = por %p217_p2, %p216_p0  ;;  %p1505_p6 = por %p223_p4, %p222_p3 }
   0xc   : > { %p1100_p7 = scmp.ge.s32.totalorder %s1405_s12, 1  ;;  %p295_p8 = scmp.lt.s32.totalorder %s1405_s12, 3 }
   0xe   : > { %p296_p9 = pnand %p1100_p7, %p295_p8 }
   0xf   : > { %p335_p10 = scmp.lt.s32.totalorder (!%p296_p9), %s1484_s13, 1  ;;  %v340_v0 = vld [vmem:[%s1762_s1] sm:$0xff] (!%p296_p9)  ;;  %vm368_vm0 = vcmask (!%p296_p9), 31744   ;;  %v346_v2 = vld [vmem:[%s1763_s2 + $0x10] sm:$0xff] (!%p296_p9)  ;;  %v1407_v3 = vmov (!%p296_p9), 0   ;;  %vm381_vm1 = vcmask (!%p296_p9), 1043456   ;;  %v699_v60 = vlaneseq (!%p296_p9) }
  0x10   : > { %299 = sbr.rel (%p296_p9) target bundleno = 963 (0x3c3), region = 52  ;;  %1176 = vmatprep.mubr.msk.f32.mxu1 (!%p296_p9), %vm368_vm0, %v340_v0  ;;  %v344_v1 = vld [vmem:[%s1763_s2] sm:$0xff] (!%p296_p9)  ;;  %1309 = vset.pattern.permute.xlu0 (!%p296_p9), %v1407_v3  ;;  %v345_v4 = vld [vmem:[%s1763_s2 + $0x8] sm:$0xff] (!%p296_p9)  ;;  %v347_v5 = vld [vmem:[%s1763_s2 + $0x18] sm:$0xff] (!%p296_p9)  ;;  %vm502_vm2 = vcmask (!%p296_p9), 261120   ;;  %vm758_vm3 = vcmask (!%p296_p9), 130048  }
  0x11   : > { %1310 = vset.pattern.permute.xlu1 (!%p296_p9), %v1407_v3  ;;  %350 = vperm.xlu0 (!%p296_p9), %1309, %v344_v1   ;;  %v341_v7 = vld [vmem:[%s1762_s1 + $0x8] sm:$0xff] (!%p296_p9)  ;;  %v342_v8 = vld [vmem:[%s1762_s1 + $0x10] sm:$0xff] (!%p296_p9)  ;;  %v478_v9 = vld [vmem:[%s1765_s4] sm:$0xff] (!%p296_p9)  ;;  %v700_v61 = vshrl.u32 (!%p296_p9), %v699_v60, 7  ;;  %s1603_s22 = sand.u32 (!%p296_p9), 1, %s1397_s10  }
  0x12   : > { %360 = vperm.xlu1 (!%p296_p9), %1310, %v346_v2   ;;  %v479_v10 = vld [vmem:[%s1765_s4 + $0x8] sm:$0xff] (!%p296_p9)  ;;  %v343_v11 = vld [vmem:[%s1762_s1 + $0x18] sm:$0xff] (!%p296_p9)  ;;  %v480_v12 = vld [vmem:[%s1765_s4 + $0x10] sm:$0xff] (!%p296_p9)  ;;  %s1772_s23 = sshll.u32 (!%p296_p9), %s1603_s22, 4 }
  0x13   : > { %v481_v13 = vld [vmem:[%s1765_s4 + $0x18] sm:$0xff] (!%p296_p9)  ;;  %v606_v14 = vld [vmem:[%s1767_s6] sm:$0xff] (!%p296_p9)  ;;  %v607_v15 = vld [vmem:[%s1767_s6 + $0x8] sm:$0xff] (!%p296_p9)  ;;  %v701_v62 = vadd.s32 (!%p296_p9), 8, %v700_v61  ;;  %v1597_v1 = vmul.u32.u64.low (!%p296_p9), 3435973837, %v700_v61  ;;  %v1598_v2 = vmul.u32.u64.high 3435973837, %v700_v61, %v1597_v1 }
  0x14   : > { %v474_v16 = vld [vmem:[%s1764_s3] sm:$0xff] (!%p296_p9)  ;;  %v475_v35 = vld [vmem:[%s1764_s3 + $0x8] sm:$0xff] (!%p296_p9)  ;;  %v476_v36 = vld [vmem:[%s1764_s3 + $0x10] sm:$0xff] (!%p296_p9)  ;;  %s1608_s24 = scalar_lea.vmem (!%p296_p9), [#allocation4], %s1772_s23 }
  0x15   : > { %355 = vperm.xlu0 (!%p296_p9), %1309, %v345_v4   ;;  %v477_v37 = vld [vmem:[%s1764_s3 + $0x18] sm:$0xff] (!%p296_p9)  ;;  %v604_v38 = vld [vmem:[%s1766_s5] sm:$0xff] (!%p296_p9)  ;;  %v605_v57 = vld [vmem:[%s1766_s5 + $0x8] sm:$0xff] (!%p296_p9)  ;;  %v1594_v63 = vmul.u32.u64.low (!%p296_p9), 3435973837, %v701_v62  ;;  %v1595_v0 = vmul.u32.u64.high 3435973837, %v701_v62, %v1594_v63  ;;  %v708_v4 = vshrl.u32 (!%p296_p9), %v1598_v2, 2 }
  0x16   : > { %365 = vperm.xlu1 (!%p296_p9), %1310, %v347_v5   ;;  %1204 = vmatprep.mubr.msk.f32.mxu0 (!%p296_p9), %vm502_vm2, %v604_v38  ;;  %v742_v58 = vld [vmem:[%s1768_s7] sm:$0xff] (!%p296_p9)  ;;  %v752_v59 = vld [vmem:[%s1768_s7 + $0x50] sm:$0xff] (!%p296_p9)  ;;  %s1003_s26 = sshll.u32 (!%p296_p9), %s1608_s24, 4  ;;  %s1670_s26 = int_to_ptr.vmem [resolvable:$true] %s1003_s26 }
  0x17   : > { %s336_s27 = scalar_select %p335_p10, %s1484_s13, 1  ;;  %v719_v3 = vshrl.u32 %v1595_v0, 2  ;;  %v750_v38 = vld [vmem:[%s1768_s7 + $0x40] sm:$0xff] }
  0x18   : > { %s1311_s17 = scalar_lea.vmem %s1670_s26, 256 }
  0x19   : > { %s1103_s28 = sshll.u32 %s336_s27, 2  ;;  %484 = vperm.xlu0 %1309, %v478_v9   ;;  %v720_v5 = vmul.u32 5, %v719_v3  ;;  %s1771_s27 = sshll.u32 %s1484_s13, 7 }
  0x1a   : > { %s338_s21 = scalar_lea.vmem %s1761_s0, %s1103_s28  ;;  %489 = vperm.xlu1 %1310, %v479_v10   ;;  %s1677_s28 = scalar_lea.hbm %s1770_s9, %s1771_s27 }
  0x1b   : > { %v339_v6 = vld [vmem:[%s338_s21] sm:$0xf]  ;;  %p1312_p11 = scmp.ne.s32.totalorder %s1670_s26, %s1311_s17  ;;  %s1408_s21 = smov [#allocation4]  }
  0x1c   : > { %1174 = vmatprep.subr.msk.mxu1 %vm381_vm1, %v339_v6 }
  0x1d   : > { %1175 = vmatpush3.msk.msra.mxu1 %vm381_vm1, %v339_v6  ;;  %494 = vperm.xlu0 %1309, %v480_v12   ;;  %v709_v6 = vmul.u32 5, %v708_v4  ;;  %p1313_p12 = pnand %p1312_p11, %p1501_p5 }
  0x1e   : > { %1177 = vmatmul.mubr.msk.f32.vlgmr.msra.gmra.mrb[0].mxu1 %vm368_vm0, %v341_v7  ;;  %499 = vperm.xlu1 %1310, %v481_v13   ;;  %v721_v7 = vsub.s32 %v701_v62, %v720_v5 }
  0x1f   : > { %1179 = vmatprep.mubr.msk.f32.mxu1 %vm368_vm0, %v342_v8  ;;  %v710_v8 = vsub.s32 %v700_v61, %v709_v6  ;;  %p1314_p13 = pneg %p1313_p12 }
  0x20   : > { %vm725_vm4 = vcmp.ne.s32.totalorder %v721_v7, 0  ;;  %vm727_vm5 = vcmp.lt.s32.totalorder %v721_v7, 0  ;;  %v731_v9 = vadd.s32 5, %v721_v7 }
  0x21   : > { %610 = vperm.xlu0 %1309, %v606_v14   ;;  %vm724_vm6 = vcmp.ne.s32.totalorder %v710_v8, 0  ;;  %vm726_vm7 = vcmp.lt.s32.totalorder %v710_v8, 0  ;;  %vm729_vm8 = vmand %vm727_vm5, %vm725_vm4  ;;  %v730_v10 = vadd.s32 5, %v710_v8 }
  0x22   : > { %1180 = vmatmul.mubr.msk.f32.gmra.mrb[2].mxu1 %vm368_vm0, %v343_v11  ;;  %615 = vperm.xlu1 %1310, %v607_v15   ;;  %vm728_vm9 = vmand %vm726_vm7, %vm724_vm6  ;;  %v733_v15 = vsel %vm729_vm8, %v731_v9, %v721_v7 }
  0x23   : > { %1190 = vmatprep.mubr.msk.f32.mxu1 %vm502_vm2, %v474_v16  ;;  %vm735_vm10 = vcmp.eq.s32.totalorder %v733_v15, 0 }
  0x90   : > { %v351_v17 = vpop.permute.xlu0 %350 }
  0x91   : > { %v361_v18 = vpop.permute.xlu1 %360 }
  0x94   : > { %v356_v19 = vpop.permute.xlu0 %355 }
  0x95   : > { %v366_v25 = vpop.permute.xlu1 %365 }
  0x98   : > { %v485_v40 = vpop.permute.xlu0 %484 }
  0x99   : > { %v490_v39 = vpop.permute.xlu1 %489 }
  0x9c   : > { %v495_v49 = vpop.permute.xlu0 %494 }
  0x9d   : > { %v500_v46 = vpop.permute.xlu1 %499 }
  0xa0   : > { %v611_v13 = vpop.permute.xlu0 %610 }
  0xa1   : > { %v616_v11 = vpop.permute.xlu1 %615 }
  0xf1   : > { %v1178_v20 = vpop.f32.mrb[0].mxu1 }
  0xf2   : > { %v457_v21 = vadd.f32 %v1178_v20, %v356_v19  ;;  %v451_v22 = vpop.f32.mrb[1].mxu1 }
  0xf3   : > { %v452_v23 = vadd.f32 %v451_v22, %v351_v17 }
  0xf4   : > { %v471_v24 = vmax.f32 %v457_v21, 0.0 }
  0xf5   : > { %v470_v26 = vmax.f32 %v452_v23, 0.0  ;;  %v1181_v27 = vpop.f32.mrb[2].mxu1 }
  0xf6   : > { %v467_v28 = vadd.f32 %v1181_v27, %v366_v25  ;;  %v461_v29 = vpop.f32.mrb[3].mxu1  ;;  %v753_v27 = vld [vmem:[%s1768_s7 + $0x58] sm:$0xff] }
  0xf7   : > { %v1235_v30 = vpack.c.bf16 %v471_v24, %v470_v26  ;;  %v462_v31 = vadd.f32 %v461_v29, %v361_v18  ;;  %v732_v18 = vsel %vm728_vm9, %v730_v10, %v710_v8  ;;  %v743_v26 = vld [vmem:[%s1768_s7 + $0x8] sm:$0xff]  ;;  %v754_v29 = vld [vmem:[%s1768_s7 + $0x60] sm:$0xff] }
  0xf8   : > { %v473_v32 = vmax.f32 %v467_v28, 0.0  ;;  %vm734_vm11 = vcmp.eq.s32.totalorder %v732_v18, 0  ;;  %v744_v28 = vld [vmem:[%s1768_s7 + $0x10] sm:$0xff] }
  0xf9   : > { %v472_v33 = vmax.f32 %v462_v31, 0.0  ;;  %1236 = vmatprep.subr.bf16.mxu1 %v1235_v30  ;;  %v755_v31 = vld [vmem:[%s1768_s7 + $0x68] sm:$0xff] }
  0xfa   : > { %1238 = vmatpush3.bf16.msra.mxu1 %v1235_v30  ;;  %v745_v30 = vld [vmem:[%s1768_s7 + $0x18] sm:$0xff] }
  0xfb   : > { %v1239_v34 = vpack.c.bf16 %v473_v32, %v472_v33  ;;  %v746_v32 = vld [vmem:[%s1768_s7 + $0x20] sm:$0xff]  ;;  %v756_v33 = vld [vmem:[%s1768_s7 + $0x70] sm:$0xff] }
  0xfd   : > { %1240 = vmatprep.subr.bf16.mxu1 %v1239_v34 }
  0xfe   : > { %1242 = vmatpush3.bf16.msra.mxu1 %v1239_v34  ;;  %v747_v34 = vld [vmem:[%s1768_s7 + $0x28] sm:$0xff] }
 0x101   : > { %1191 = vmatmul.mubr.msk.f32.vlgmr.msra.gmra.mrb[4].mxu1 %vm502_vm2, %v475_v35  ;;  %v757_v35 = vld [vmem:[%s1768_s7 + $0x78] sm:$0xff] }
 0x102   : > { %1193 = vmatprep.mubr.msk.f32.mxu1 %vm502_vm2, %v476_v36  ;;  %v748_v36 = vld [vmem:[%s1768_s7 + $0x30] sm:$0xff] }
 0x105   : > { %1194 = vmatmul.mubr.msk.f32.gmra.mrb[6].mxu1 %vm502_vm2, %v477_v37  ;;  %v749_v37 = vld [vmem:[%s1768_s7 + $0x38] sm:$0xff] }
 0x106   : > { %1226 = vmatprep.mubr.msk.f32.mxu1 %vm758_vm3, %v752_v59 }
 0x1d4   : > { %v1192_v41 = vpop.f32.mrb[4].mxu1 }
 0x1d5   : > { %v587_v42 = vadd.f32 %v1192_v41, %v490_v39  ;;  %v581_v43 = vpop.f32.mrb[5].mxu1  ;;  %v751_v39 = vld [vmem:[%s1768_s7 + $0x48] sm:$0xff] }
 0x1d6   : > { %v582_v44 = vadd.f32 %v581_v43, %v485_v40 }
 0x1d7   : > { %v601_v45 = vmax.f32 %v587_v42, 0.0 }
 0x1d8   : > { %v600_v47 = vmax.f32 %v582_v44, 0.0  ;;  %v1195_v48 = vpop.f32.mrb[6].mxu1 }
 0x1d9   : > { %v597_v50 = vadd.f32 %v1195_v48, %v500_v46  ;;  %v591_v51 = vpop.f32.mrb[7].mxu1 }
 0x1da   : > { %v592_v52 = vadd.f32 %v591_v51, %v495_v49  ;;  %v1243_v53 = vpack.c.bf16 %v601_v45, %v600_v47 }
 0x1db   : > { %v603_v54 = vmax.f32 %v597_v50, 0.0 }
 0x1dc   : > { %v602_v55 = vmax.f32 %v592_v52, 0.0  ;;  %1244 = vmatprep.subr.bf16.mxu0 %v1243_v53 }
 0x1dd   : > { %1246 = vmatpush3.bf16.msra.mxu0 %v1243_v53 }
 0x1de   : > { %v1247_v56 = vpack.c.bf16 %v603_v54, %v602_v55 }
 0x1e0   : > { %1248 = vmatprep.subr.bf16.mxu0 %v1247_v56 }
 0x1e1   : > { %1250 = vmatpush3.bf16.msra.mxu0 %v1247_v56 }
 0x1e4   : > { %1205 = vmatmul.mubr.msk.f32.vlgmr.msra.gmra.mrb[0].mxu0 %vm502_vm2, %v605_v57 }
 0x1e5   : > { %1211 = vmatprep.mubr.msk.f32.mxu0 %vm758_vm3, %v742_v58 }
 0x2b7   : > { %v1206_v12 = vpop.f32.mrb[0].mxu0 }
 0x2b8   : > { %v696_v14 = vadd.f32 %v1206_v12, %v616_v11  ;;  %v690_v16 = vpop.f32.mrb[1].mxu0 }
 0x2b9   : > { %v691_v17 = vadd.f32 %v690_v16, %v611_v13 }
 0x2ba   : > { %v737_v19 = vand.u32 2147483647, %v696_v14 }
 0x2bb   : > { %v736_v20 = vand.u32 2147483647, %v691_v17 }
 0x2bc   : > { %v739_v21 = vadd.f32 1e-05, %v737_v19 }
 0x2bd   : > { %v738_v22 = vadd.f32 1e-05, %v736_v20 }
 0x2be   : > { %v741_v23 = vsel %vm735_vm10, %v739_v21, %v696_v14 }
 0x2bf   : > { %969 = vst [vmem:[%s1608_s24 + $0x8] sm:$0xff] %v741_v23  ;;  %v740_v24 = vsel %vm734_vm11, %v738_v22, %v691_v17 }
 0x2c0   : > { %v1251_v25 = vpack.c.bf16 %v741_v23, %v740_v24  ;;  %968 = vst [vmem:[%s1608_s24] sm:$0xff] %v740_v24  ;;  %s1315_s24 = sshll.u32 %s1408_s21, 4  ;;  %s1316_s24 = int_to_ptr.vmem [resolvable:$false] %s1315_s24 }
 0x2c1   : > { %s1317_s25 = scalar_lea.vmem %s1316_s24, 512  ;;  %p1318_p0 = scmp.lt.s32.totalorder %s1670_s26, %s1316_s24 }
 0x2c2   : > { %1252 = vmatprep.subr.bf16.mxu0 %v1251_v25  ;;  %1255 = vmatprep.subr.bf16.mxu1 %v1251_v25  ;;  %p1319_p1 = scmp.lt.s32.totalorder %s1317_s25, %s1311_s17 }
 0x2c3   : > { %1254 = vmatpush3.bf16.msra.mxu0 %v1251_v25  ;;  %1256 = vmatpush3.bf16.msra.mxu1 %v1251_v25 }
 0x2c4   : > { %p1320_p2 = por %p1319_p1, %p1318_p0 }
 0x2c6   : > { %1212 = vmatmul.mubr.msk.f32.vlgmr.msra.gmra.mrb[2].mxu0 %vm758_vm3, %v743_v26  ;;  %1227 = vmatmul.mubr.msk.f32.vlgmr.msra.gmra.mrb[8].mxu1 %vm758_vm3, %v753_v27  ;;  %p1321_p3 = pnand %p1320_p2, %p1314_p13 }
 0x2c7   : > { %1214 = vmatprep.mubr.msk.f32.mxu0 %vm758_vm3, %v744_v28  ;;  %1229 = vmatprep.mubr.msk.f32.mxu1 %vm758_vm3, %v754_v29 }
 0x2ca   : > { %1215 = vmatmul.mubr.msk.f32.gmra.mrb[4].mxu0 %vm758_vm3, %v745_v30  ;;  %1230 = vmatmul.mubr.msk.f32.gmra.mrb[10].mxu1 %vm758_vm3, %v755_v31 }
 0x2cb   : > { %1217 = vmatprep.mubr.msk.f32.mxu0 %vm758_vm3, %v746_v32  ;;  %1232 = vmatprep.mubr.msk.f32.mxu1 %vm758_vm3, %v756_v33 }
 0x2ce   : > { %1218 = vmatmul.mubr.msk.f32.gmra.mrb[6].mxu0 %vm758_vm3, %v747_v34  ;;  %1233 = vmatmul.mubr.msk.f32.gmra.mrb[12].mxu1 %vm758_vm3, %v757_v35 }
 0x2cf   : > { %1220 = vmatprep.mubr.msk.f32.mxu0 %vm758_vm3, %v748_v36 }
 0x2d2   : > { %1221 = vmatmul.mubr.msk.f32.gmra.mrb[8].mxu0 %vm758_vm3, %v749_v37 }
 0x2d3   : > { %1223 = vmatprep.mubr.msk.f32.mxu0 %vm758_vm3, %v750_v38 }
 0x2d6   : > { %1224 = vmatmul.mubr.msk.f32.gmra.mrb[10].mxu0 %vm758_vm3, %v751_v39 }
 0x2d7   : > { %1324 = shalt.err (!%p1321_p3)
}
 0x2d8   : > { %s1325_s29 = scalar_lea.hbm %s1677_s28, 256  ;;  %s1329_s21 = scalar_lea.hbm %s1770_s9, 512 }
 0x2d9   : > { %p1326_p4 = scmp.ne.s32.totalorder %s1677_s28, %s1325_s29  ;;  %p1330_p9 = scmp.lt.u32.totalorder %s1677_s28, %s1770_s9 }
 0x2da   : > { %p1331_p10 = scmp.lt.u32.totalorder %s1329_s21, %s1325_s29  ;;  %p1333_p12 = scmp.lt.u32.totalorder %s1325_s29, %s1677_s28 }
 0x2db   : > { %p1327_p7 = pnand %p1326_p4, %p1501_p5 }
 0x2dc   : > { %p1332_p11 = por %p1331_p10, %p1330_p9 }
 0x2dd   : > { %p1328_p8 = pneg %p1327_p7 }
 0x2de   : > { %p1334_p13 = por %p1333_p12, %p1332_p11 }
 0x2e0   : > { %p1335_p0 = pnand %p1334_p13, %p1328_p8 }
 0x2e2   : > { %1338 = shalt.err (!%p1335_p0)
}
 0x2e3   : > { %s1773_s17 = smov 128   ;;  %s1774_s25 = smov 256  }
 0x2e4   : > { %s1775_s16 = smov 8   ;;  %s1778_s27 = scalar_lea.sflag [#allocation5], %s1603_s22 }
 0x2e5   : > { %1262 = dma.vmem_to_hbm [thread:$0]  (%p1501_p5), %s1670_s26, 256, %s1677_s28, %s1778_s27, %s1773_s17, %s1774_s25, %s1775_s16  }
 0x2e6   : > { %s1779_s23 = sshll.u32 %s1603_s22, 4  ;;  %s1780_s29 = sshll.u32 %s1484_s13, 7 }
 0x2e7   : > { %s327_s26 = scalar_lea.vmem [#allocation2], %s1779_s23  ;;  %s1715_s24 = scalar_lea.hbm %s1769_s8, %s1780_s29 }
 0x2e8   : > { %s988_s28 = sshll.u32 %s327_s26, 4  ;;  %s971_s27 = scalar_lea.sflag [#allocation3], %s1603_s22  ;;  %s1708_s28 = int_to_ptr.vmem [resolvable:$true] %s988_s28 }
 0x2e9   : > { %s1339_s23 = scalar_lea.vmem %s1708_s28, 256  ;;  %s1412_s17 = smov [#allocation2]  }
 0x2ea   : > { %p1340_p1 = scmp.ne.s32.totalorder %s1708_s28, %s1339_s23  ;;  %s1343_s25 = sshll.u32 %s1412_s17, 4  ;;  %s1344_s25 = int_to_ptr.vmem [resolvable:$false] %s1343_s25 }
 0x2eb   : > { %s1345_s16 = scalar_lea.vmem %s1344_s25, 512  ;;  %p1346_p4 = scmp.lt.s32.totalorder %s1708_s28, %s1344_s25 }
 0x2ec   : > { %p1341_p2 = pnand %p1340_p1, %p1501_p5  ;;  %p1347_p7 = scmp.lt.s32.totalorder %s1345_s16, %s1339_s23 }
 0x2ee   : > { %p1342_p3 = pneg %p1341_p2  ;;  %p1348_p8 = por %p1347_p7, %p1346_p4 }
 0x2f0   : > { %p1349_p9 = pnand %p1348_p8, %p1342_p3 }
 0x399   : > { %v1213_v40 = vpop.f32.mrb[2].mxu0  ;;  %v1228_v41 = vpop.f32.mrb[8].mxu1 }
 0x39a   : > { %v873_v42 = vpop.f32.mrb[3].mxu0  ;;  %v923_v43 = vpop.f32.mrb[9].mxu1 }
 0x39d   : > { %v1216_v44 = vpop.f32.mrb[4].mxu0  ;;  %v1231_v45 = vpop.f32.mrb[10].mxu1 }
 0x39e   : > { %v955_v46 = vmul.f32 %v1228_v41, %v1216_v44  ;;  %v883_v47 = vpop.f32.mrb[5].mxu0  ;;  %v933_v48 = vpop.f32.mrb[11].mxu1 }
 0x39f   : > { %v954_v49 = vmul.f32 %v923_v43, %v883_v47 }
 0x3a1   : > { %v1219_v50 = vpop.f32.mrb[6].mxu0  ;;  %v1234_v51 = vpop.f32.mrb[12].mxu1 }
 0x3a2   : > { %v957_v52 = vmul.f32 %v1231_v45, %v1219_v50  ;;  %v893_v53 = vpop.f32.mrb[7].mxu0  ;;  %v943_v54 = vpop.f32.mrb[13].mxu1 }
 0x3a3   : > { %v956_v55 = vmul.f32 %v933_v48, %v893_v53 }
 0x3a5   : > { %v1222_v56 = vpop.f32.mrb[8].mxu0 }
 0x3a6   : > { %v959_v57 = vmul.f32 %v1234_v51, %v1222_v56  ;;  %v903_v58 = vpop.f32.mrb[9].mxu0 }
 0x3a7   : > { %v958_v59 = vmul.f32 %v943_v54, %v903_v58 }
 0x3a9   : > { %v1225_v60 = vpop.f32.mrb[10].mxu0 }
 0x3aa   : > { %v953_v61 = vmul.f32 %v1225_v60, %v1213_v40  ;;  %v913_v62 = vpop.f32.mrb[11].mxu0 }
 0x3ab   : > { %v952_v63 = vmul.f32 %v913_v62, %v873_v42 }
 0x3ac   : > { %v961_v0 = vadd.f32 %v955_v46, %v953_v61 }
 0x3ad   : > { %v960_v1 = vadd.f32 %v954_v49, %v952_v63 }
 0x3ae   : > { %v963_v2 = vadd.f32 %v961_v0, %v957_v52 }
 0x3af   : > { %v962_v3 = vadd.f32 %v960_v1, %v956_v55 }
 0x3b0   : > { %v965_v4 = vadd.f32 %v963_v2, %v959_v57 }
 0x3b1   : > { %v964_v5 = vadd.f32 %v962_v3, %v958_v59 }
 0x3b2   : > { %967 = vst [vmem:[%s327_s26 + $0x8] sm:$0xff] %v965_v4 }
 0x3b3   : > { %966 = vst [vmem:[%s327_s26] sm:$0xff] %v964_v5 }
 0x3b4   : > { %1352 = shalt.err (!%p1349_p9)
}
 0x3b5   : > { %s1353_s13 = scalar_lea.hbm %s1715_s24, 256  ;;  %s1357_s17 = scalar_lea.hbm %s1769_s8, 512 }
 0x3b6   : > { %p1354_p10 = scmp.ne.s32.totalorder %s1715_s24, %s1353_s13  ;;  %p1358_p13 = scmp.lt.u32.totalorder %s1715_s24, %s1769_s8 }
 0x3b7   : > { %p1359_p0 = scmp.lt.u32.totalorder %s1357_s17, %s1353_s13  ;;  %p1361_p2 = scmp.lt.u32.totalorder %s1353_s13, %s1715_s24 }
 0x3b8   : > { %p1355_p11 = pnand %p1354_p10, %p1501_p5 }
 0x3b9   : > { %p1360_p1 = por %p1359_p0, %p1358_p13 }
 0x3ba   : > { %p1356_p12 = pneg %p1355_p11 }
 0x3bb   : > { %p1362_p3 = por %p1361_p2, %p1360_p1 }
 0x3bd   : > { %p1363_p4 = pnand %p1362_p3, %p1356_p12 }
 0x3bf   : > { %1366 = shalt.err (!%p1363_p4)
}
 0x3c0   : > { %s1781_s16 = smov 8   ;;  %s1782_s21 = smov 256  }
 0x3c1   : > { %s1783_s23 = smov 128  }
 0x3c2   : > { %1261 = dma.vmem_to_hbm [thread:$0]  (%p1501_p5), %s1708_s28, 256, %s1715_s24, %s971_s27, %s1783_s23, %s1782_s21, %s1781_s16  }
 0x3c3 PF: > { %p1272_p7 = scmp.ge.s32.totalorder %s1405_s12, 2  ;;  %s1018_s26 = sand.u32 1, %s1393_s30  }
 0x3c4   : > { %s1019_s13 = scalar_lea.sflag [#allocation3], %s1018_s26 }
 0x3c5   : > { %p1266_p8 = pnand %p1272_p7, %p1505_p6 }
 0x3c7   : > { %1384 = dma.done.wait (!%p1266_p8), %s1019_s13, 256  }
 0x3c8   : > { %1386 = vsyncadd (!%p1266_p8), %s1019_s13, 4294967040  ;;  %s1028_s19 = scalar_lea.sflag [#allocation5], %s1018_s26 }
 0x3c9   : > { %1388 = dma.done.wait (!%p1266_p8), %s1028_s19, 256  }
 0x3ca   : > { %1390 = vsyncadd (!%p1266_p8), %s1028_s19, 4294967040  ;;  %p23_p5 = scmp.ge.s32.totalorder %s1488_s15, 4   ;;  %s1784_s30 = smov %s1397_s10 }
 0x3cb   : > { %s1785_s10 = smov %s1401_s11  ;;  %s1786_s11 = smov %s1499_s18 }
 0x3cc   : > { %s1787_s12 = smov %s1488_s15  ;;  %25 = sbr.rel (!%p23_p5) target bundleno = 5 (0x5), region = 104 }
 0x3d3   :  { %1033 = vsyncpa [#allocation3], 1 }
 0x3d4   :  { %1035 = vsyncpa [#allocation3 + $0x1], 1 }
 0x3d5   :  { %1036 = vsyncpa [#allocation5], 1 }
 0x3d6   :  { %1038 = vsyncpa [#allocation5 + $0x1], 1 }

</bundles_post_ra>
